<compile_context>
chip_gen: v6e
topology: v6e:2x2x1
jax: 0.10.0
libtpu: 0.0.40
codegen_flags: <defaults>
</compile_context>

<pallas_src>
import functools

import jax
import jax.numpy as jnp
from jax.experimental import pallas as pl
from jax.experimental.pallas import tpu as pltpu

BN_EPS = 1e-5


def _round_up(x, m):
    return (x + m - 1) // m * m


def _vmem_limit_bytes():
    try:
        cap = int(pltpu.get_tpu_info().vmem_capacity_bytes)
    except Exception:
        cap = 64 * 1024 * 1024  # conservative default (v7x-sized)
    return int(min((3 * cap) // 4, 100 * 1024 * 1024))


def _conv_tile(x_ref, w_ref, taps, l_pad):
    """Stacked-tap conv: one (Cout, T*Cin) x (T*Cin, L_pad) MXU matmul, f32 accumulation."""
    xs = jnp.concatenate([x_ref[0, :, off:off + l_pad] for off in taps], axis=0)
    return jnp.dot(w_ref[...], xs, preferred_element_type=jnp.float32)


def _valid_mask(l_pad, wp, wo, ho_wp):
    """1.0 at real output columns (flat q = ho*Wp + wo with wo < Wo, q < Ho*Wp), else 0."""
    cols = jax.lax.broadcasted_iota(jnp.int32, (1, l_pad), 1)
    return ((cols % wp < wo) & (cols < ho_wp)).astype(jnp.float32)


# ---------------------------------------------------------------------------------------
# Fused single-pass kernel (whole problem VMEM-resident): conv + stats + BN + ReLU.
# Output BlockSpec has a constant index map -> the full (N, Cout, L_pad) result stays
# resident in VMEM across the batch grid; conv tiles are stored into it, stats accumulate
# in scratch, and the final grid step normalizes everything in place before writeback.
# ---------------------------------------------------------------------------------------
def _fused_kernel(x_ref, w_ref, g_ref, b_ref, o_ref, sum_sc, sq_sc, *,
                  taps, l_pad, wp, wo, ho_wp, n_imgs, inv_count):
    i = pl.program_id(0)

    @pl.when(i == 0)
    def _():
        sum_sc[...] = jnp.zeros_like(sum_sc)
        sq_sc[...] = jnp.zeros_like(sq_sc)

    acc = _conv_tile(x_ref, w_ref, taps, l_pad)              # (Cout, L_pad) f32
    mask = _valid_mask(l_pad, wp, wo, ho_wp)                 # (1, L_pad)
    masked = acc * mask
    sum_sc[...] += jnp.sum(masked, axis=1, keepdims=True)    # (Cout, 1)
    sq_sc[...] += jnp.sum(masked * acc, axis=1, keepdims=True)
    o_ref[i] = acc                                           # VMEM-resident conv buffer

    @pl.when(i == n_imgs - 1)
    def _():
        mean = sum_sc[...] * inv_count                       # (Cout, 1)
        var = jnp.maximum(sq_sc[...] * inv_count - mean * mean, 0.0)
        inv = jax.lax.rsqrt(var + BN_EPS)
        scale = g_ref[...] * inv                             # (Cout, 1)
        shift = b_ref[...] - mean * scale
        y = o_ref[...]                                       # (N, Cout, L_pad)
        o_ref[...] = jnp.maximum(y * scale[None] + shift[None], 0.0)


# ---------------------------------------------------------------------------------------
# Two-pass fallback (conv intermediate in HBM as bf16) for problems too big for VMEM.
# ---------------------------------------------------------------------------------------
def _conv_stats_kernel(x_ref, w_ref, y_ref, sum_ref, sq_ref, *,
                       taps, l_pad, wp, wo, ho_wp):
    acc = _conv_tile(x_ref, w_ref, taps, l_pad)              # (Cout, L_pad) f32
    y_ref[0] = acc.astype(y_ref.dtype)                       # bf16 intermediate -> HBM
    mask = _valid_mask(l_pad, wp, wo, ho_wp)
    masked = acc * mask
    sum_ref[0] = jnp.sum(masked, axis=1, keepdims=True)
    sq_ref[0] = jnp.sum(masked * acc, axis=1, keepdims=True)


def _bn_relu_kernel(y_ref, scale_ref, shift_ref, o_ref):
    y = y_ref[0].astype(jnp.float32)                         # (Cout, L_pad)
    o_ref[0] = jnp.maximum(y * scale_ref[...] + shift_ref[...], 0.0)


def conv_norm_act(x_nchw, w_oihw, gamma, beta, *, stride=1, padding=1):
    """Conv2d(bias=False) -> BatchNorm2d(training batch stats) -> ReLU. NCHW in/out."""
    N, Cin, H, W = x_nchw.shape
    Cout, Cin_w, KH, KW = w_oihw.shape
    assert Cin == Cin_w, "groups=1, separable=False only"
    # TODO(synk): strided / grouped / separable conv variants are not implemented here.
    assert stride == 1, "Pallas path implements stride=1"

    Hp, Wp = H + 2 * padding, W + 2 * padding
    Ho, Wo = Hp - KH + 1, Wp - KW + 1
    T = KH * KW
    L_pad = _round_up(Ho * Wp, 128)                  # lane-dense conv-output width
    off_max = (KH - 1) * Wp + (KW - 1)
    needed = off_max + L_pad                         # flat input width incl. tap halo
    extra_rows = max(0, -(-(needed - Hp * Wp) // Wp))
    L_in = (Hp + extra_rows) * Wp

    # bf16 FIRST, then a single pad covering both the conv padding and the flat-tail halo.
    x_flat = jnp.pad(
        x_nchw.astype(jnp.bfloat16),
        ((0, 0), (0, 0), (padding, padding + extra_rows), (padding, padding)),
    ).reshape(N, Cin, L_in)

    # OIHW -> (Cout, T*Cin), columns ordered tap-major (t = kh*KW + kw) then Cin; this
    # matches the in-kernel concatenation order of the shifted slices.
    w_mat = jnp.transpose(w_oihw.astype(jnp.bfloat16), (0, 2, 3, 1)).reshape(Cout, T * Cin)
    taps = tuple(kh * Wp + kw for kh in range(KH) for kw in range(KW))

    g2 = gamma.astype(jnp.float32).reshape(Cout, 1)
    b2 = beta.astype(jnp.float32).reshape(Cout, 1)

    vmem_limit = _vmem_limit_bytes()
    cparams_arb = pltpu.CompilerParams(dimension_semantics=("arbitrary",),
                                       vmem_limit_bytes=vmem_limit)
    cparams_par = pltpu.CompilerParams(dimension_semantics=("parallel",),
                                       vmem_limit_bytes=vmem_limit)

    count = N * Ho * Wo
    flops = 2 * N * Cout * T * Cin * L_pad

    # Rough VMEM need of the fused path: double-buffered bf16 input block, resident f32
    # output (+ a same-size temp for the final normalize), stacked operand + acc temps.
    fused_need = (2 * Cin * L_in * 2 + 2 * N * Cout * L_pad * 4
                  + T * Cin * L_pad * 2 + Cout * L_pad * 4 + (2 << 20))

    if fused_need <= vmem_limit // 2:
        # ---- single fused pass: conv + stats + BN + ReLU, no HBM intermediate ----
        kern = functools.partial(_fused_kernel, taps=taps, l_pad=L_pad, wp=Wp, wo=Wo,
                                 ho_wp=Ho * Wp, n_imgs=N, inv_count=1.0 / count)
        y_flat = pl.pallas_call(
            kern,
            out_shape=jax.ShapeDtypeStruct((N, Cout, L_pad), jnp.float32),
            grid=(N,),
            in_specs=[pl.BlockSpec((1, Cin, L_in), lambda n: (n, 0, 0)),
                      pl.BlockSpec((Cout, T * Cin), lambda n: (0, 0)),
                      pl.BlockSpec((Cout, 1), lambda n: (0, 0)),
                      pl.BlockSpec((Cout, 1), lambda n: (0, 0))],
            out_specs=pl.BlockSpec((N, Cout, L_pad), lambda n: (0, 0, 0)),
            scratch_shapes=[pltpu.VMEM((Cout, 1), jnp.float32),
                            pltpu.VMEM((Cout, 1), jnp.float32)],
            compiler_params=cparams_arb,
            cost_estimate=pl.CostEstimate(
                flops=flops, transcendentals=0,
                bytes_accessed=(N * Cin * L_in * 2 + Cout * T * Cin * 2
                                + N * Cout * L_pad * 4)),
        )(x_flat, w_mat, g2, b2)
    else:
        # ---- pass 1: conv (stacked-tap matmul) + per-image channel stat partials ----
        # TODO(synk): L-tile the spatial axis (with off_max halo) for very large H*W so
        # per-step VMEM stays bounded on v7x (64 MiB) and both TensorCores get work.
        kern1 = functools.partial(_conv_stats_kernel, taps=taps, l_pad=L_pad, wp=Wp,
                                  wo=Wo, ho_wp=Ho * Wp)
        conv_flat, csum, csq = pl.pallas_call(
            kern1,
            out_shape=(jax.ShapeDtypeStruct((N, Cout, L_pad), jnp.bfloat16),
                       jax.ShapeDtypeStruct((N, Cout, 1), jnp.float32),
                       jax.ShapeDtypeStruct((N, Cout, 1), jnp.float32)),
            grid=(N,),
            in_specs=[pl.BlockSpec((1, Cin, L_in), lambda n: (n, 0, 0)),
                      pl.BlockSpec((Cout, T * Cin), lambda n: (0, 0))],
            out_specs=(pl.BlockSpec((1, Cout, L_pad), lambda n: (n, 0, 0)),
                       pl.BlockSpec((1, Cout, 1), lambda n: (n, 0, 0)),
                       pl.BlockSpec((1, Cout, 1), lambda n: (n, 0, 0))),
            compiler_params=cparams_par,
            cost_estimate=pl.CostEstimate(
                flops=flops, transcendentals=0,
                bytes_accessed=(N * Cin * L_in * 2 + Cout * T * Cin * 2
                                + N * Cout * L_pad * 2 + N * Cout * 8)),
        )(x_flat, w_mat)

        # Tiny per-channel BN scalar glue (global stats across all tiles).
        gf = gamma.astype(jnp.float32)
        bf = beta.astype(jnp.float32)
        mean = jnp.sum(csum[:, :, 0], axis=0) / count
        ex2 = jnp.sum(csq[:, :, 0], axis=0) / count
        var = jnp.maximum(ex2 - mean * mean, 0.0)
        inv = jax.lax.rsqrt(var + BN_EPS)
        scale = (gf * inv).reshape(Cout, 1)
        shift = (bf - mean * gf * inv).reshape(Cout, 1)

        # ---- pass 2: fused affine-BN + ReLU over the bf16 intermediate ----
        y_flat = pl.pallas_call(
            _bn_relu_kernel,
            out_shape=jax.ShapeDtypeStruct((N, Cout, L_pad), jnp.float32),
            grid=(N,),
            in_specs=[pl.BlockSpec((1, Cout, L_pad), lambda n: (n, 0, 0)),
                      pl.BlockSpec((Cout, 1), lambda n: (0, 0)),
                      pl.BlockSpec((Cout, 1), lambda n: (0, 0))],
            out_specs=pl.BlockSpec((1, Cout, L_pad), lambda n: (n, 0, 0)),
            compiler_params=cparams_par,
        )(conv_flat, scale, shift)

    # Single trim to tight NCHW (flat q = ho*Wp + wo). Downstream Pallas consumers should
    # keep the lane-padded (N, Cout, L_pad) layout instead and skip this copy.
    y = y_flat[:, :, :Ho * Wp].reshape(N, Cout, Ho, Wp)[..., :Wo]
    return y


def _reference(x_nchw, w_oihw, gamma, beta, *, stride=1, padding=1):
    """Plain-JAX reference (inputs rounded to bf16 to match the kernel's MXU operands)."""
    xb = x_nchw.astype(jnp.bfloat16).astype(jnp.float32)
    wb = w_oihw.astype(jnp.bfloat16).astype(jnp.float32)
    y = jax.lax.conv_general_dilated(
        xb, wb, window_strides=(stride, stride),
        padding=[(padding, padding), (padding, padding)],
        dimension_numbers=("NCHW", "OIHW", "NCHW"),
        precision=jax.lax.Precision.HIGHEST)
    mean = jnp.mean(y, axis=(0, 2, 3), keepdims=True)
    var = jnp.mean(jnp.square(y - mean), axis=(0, 2, 3), keepdims=True)
    y = (y - mean) * jax.lax.rsqrt(var + BN_EPS)
    y = y * gamma.reshape(1, -1, 1, 1) + beta.reshape(1, -1, 1, 1)
    return jnp.maximum(y, 0.0)


if __name__ == "__main__":
    # ConvNormAct(in_channels=4, out_channels=8, kernel_size=3, stride=1, padding=1)
    N, Cin, H, W = 2, 4, 16, 16
    Cout, KH, KW = 8, 3, 3

    key = jax.random.PRNGKey(0)
    kx, kw = jax.random.split(key)
    x = jax.random.normal(kx, (N, Cin, H, W), dtype=jnp.float32)
    w = jax.random.normal(kw, (Cout, Cin, KH, KW), dtype=jnp.float32) * 0.1
    gamma = jnp.ones((Cout,), jnp.float32)   # BatchNorm2d default weight
    beta = jnp.zeros((Cout,), jnp.float32)   # BatchNorm2d default bias

    out = conv_norm_act(x, w, gamma, beta, stride=1, padding=1)
    out = jax.block_until_ready(out)

    ref = _reference(x, w, gamma, beta, stride=1, padding=1)
    assert out.shape == (N, Cout, H, W)
    max_err = float(jnp.max(jnp.abs(out - ref)))
    assert jnp.allclose(out, ref, atol=2e-3, rtol=2e-3), f"mismatch vs reference: {max_err}"
    print("KERNEL_OK")
</pallas_src>

<mosaic_0001>
module attributes {stable_mosaic.version = 11 : i64} {
  func.func @_fused_kernel(%arg0: i32, %arg1: memref<1x4x432xbf16, #tpu.memory_space<vmem>>, %arg2: memref<8x36xbf16, #tpu.memory_space<vmem>>, %arg3: memref<8x1xf32, #tpu.memory_space<vmem>>, %arg4: memref<8x1xf32, #tpu.memory_space<vmem>>, %arg5: memref<2x8x384xf32, #tpu.memory_space<vmem>>, %arg6: memref<8x1xf32, #tpu.memory_space<vmem>>, %arg7: memref<8x1xf32, #tpu.memory_space<vmem>>) attributes {dimension_semantics = [#tpu.dimension_semantics<arbitrary>], iteration_bounds = array<i64: 2>, scalar_prefetch = 0 : i64, scratch_operands = 2 : i64, tpu.core_type = #tpu.core_type<tc>, window_params = [{transform_indices = @transform_0, window_bounds = array<i64: 1, 4, 432>}, {pipeline_mode = #tpu.pipeline_mode<synchronous>, transform_indices = @transform_1, window_bounds = array<i64: 8, 36>}, {pipeline_mode = #tpu.pipeline_mode<synchronous>, transform_indices = @transform_2, window_bounds = array<i64: 8, 1>}, {pipeline_mode = #tpu.pipeline_mode<synchronous>, transform_indices = @transform_3, window_bounds = array<i64: 8, 1>}, {pipeline_mode = #tpu.pipeline_mode<synchronous>, transform_indices = @transform_4, window_bounds = array<i64: 2, 8, 384>}]} {
    %c0_i32 = arith.constant 0 : i32
    %0 = arith.cmpi eq, %arg0, %c0_i32 : i32
    %1 = arith.extui %0 : i1 to i32
    %c0_i32_0 = arith.constant 0 : i32
    %2 = arith.cmpi ne, %1, %c0_i32_0 : i32
    scf.if %2 {
      %cst_39 = arith.constant 0.000000e+00 : f32
      %68 = vector.broadcast %cst_39 : f32 to vector<8x1xf32>
      %c0_40 = arith.constant 0 : index
      %c0_41 = arith.constant 0 : index
      %69 = vector.load %arg6[%c0_40, %c0_41] : memref<8x1xf32, #tpu.memory_space<vmem>>, vector<8x1xf32>
      tpu.vector_store %arg6[%c0_40, %c0_41], %68 {strides = array<i32>} : memref<8x1xf32, #tpu.memory_space<vmem>>, vector<8x1xf32>,
      %cst_42 = arith.constant 0.000000e+00 : f32
      %70 = vector.broadcast %cst_42 : f32 to vector<8x1xf32>
      %c0_43 = arith.constant 0 : index
      %c0_44 = arith.constant 0 : index
      %71 = vector.load %arg7[%c0_43, %c0_44] : memref<8x1xf32, #tpu.memory_space<vmem>>, vector<8x1xf32>
      tpu.vector_store %arg7[%c0_43, %c0_44], %70 {strides = array<i32>} : memref<8x1xf32, #tpu.memory_space<vmem>>, vector<8x1xf32>,
    } else {
    }
    %c0 = arith.constant 0 : index
    %c0_1 = arith.constant 0 : index
    %c0_2 = arith.constant 0 : index
    %3 = vector.load %arg1[%c0, %c0_1, %c0_2] : memref<1x4x432xbf16, #tpu.memory_space<vmem>>, vector<1x4x384xbf16>
    %4 = vector.shape_cast %3 : vector<1x4x384xbf16> to vector<4x384xbf16>
    %c0_3 = arith.constant 0 : index
    %c0_4 = arith.constant 0 : index
    %c1 = arith.constant 1 : index
    %5 = vector.load %arg1[%c0_3, %c0_4, %c1] : memref<1x4x432xbf16, #tpu.memory_space<vmem>>, vector<1x4x384xbf16>
    %6 = vector.shape_cast %5 : vector<1x4x384xbf16> to vector<4x384xbf16>
    %c0_5 = arith.constant 0 : index
    %c0_6 = arith.constant 0 : index
    %c2 = arith.constant 2 : index
    %7 = vector.load %arg1[%c0_5, %c0_6, %c2] : memref<1x4x432xbf16, #tpu.memory_space<vmem>>, vector<1x4x384xbf16>
    %8 = vector.shape_cast %7 : vector<1x4x384xbf16> to vector<4x384xbf16>
    %c0_7 = arith.constant 0 : index
    %c0_8 = arith.constant 0 : index
    %c18 = arith.constant 18 : index
    %9 = vector.load %arg1[%c0_7, %c0_8, %c18] : memref<1x4x432xbf16, #tpu.memory_space<vmem>>, vector<1x4x384xbf16>
    %10 = vector.shape_cast %9 : vector<1x4x384xbf16> to vector<4x384xbf16>
    %c0_9 = arith.constant 0 : index
    %c0_10 = arith.constant 0 : index
    %c19 = arith.constant 19 : index
    %11 = vector.load %arg1[%c0_9, %c0_10, %c19] : memref<1x4x432xbf16, #tpu.memory_space<vmem>>, vector<1x4x384xbf16>
    %12 = vector.shape_cast %11 : vector<1x4x384xbf16> to vector<4x384xbf16>
    %c0_11 = arith.constant 0 : index
    %c0_12 = arith.constant 0 : index
    %c20 = arith.constant 20 : index
    %13 = vector.load %arg1[%c0_11, %c0_12, %c20] : memref<1x4x432xbf16, #tpu.memory_space<vmem>>, vector<1x4x384xbf16>
    %14 = vector.shape_cast %13 : vector<1x4x384xbf16> to vector<4x384xbf16>
    %c0_13 = arith.constant 0 : index
    %c0_14 = arith.constant 0 : index
    %c36 = arith.constant 36 : index
    %15 = vector.load %arg1[%c0_13, %c0_14, %c36] : memref<1x4x432xbf16, #tpu.memory_space<vmem>>, vector<1x4x384xbf16>
    %16 = vector.shape_cast %15 : vector<1x4x384xbf16> to vector<4x384xbf16>
    %c0_15 = arith.constant 0 : index
    %c0_16 = arith.constant 0 : index
    %c37 = arith.constant 37 : index
    %17 = vector.load %arg1[%c0_15, %c0_16, %c37] : memref<1x4x432xbf16, #tpu.memory_space<vmem>>, vector<1x4x384xbf16>
    %18 = vector.shape_cast %17 : vector<1x4x384xbf16> to vector<4x384xbf16>
    %c0_17 = arith.constant 0 : index
    %c0_18 = arith.constant 0 : index
    %c38 = arith.constant 38 : index
    %19 = vector.load %arg1[%c0_17, %c0_18, %c38] : memref<1x4x432xbf16, #tpu.memory_space<vmem>>, vector<1x4x384xbf16>
    %20 = vector.shape_cast %19 : vector<1x4x384xbf16> to vector<4x384xbf16>
    %21 = tpu.concatenate %4, %6, %8, %10, %12, %14, %16, %18, %20 in 0 : vector<4x384xbf16>, vector<4x384xbf16>, vector<4x384xbf16>, vector<4x384xbf16>, vector<4x384xbf16>, vector<4x384xbf16>, vector<4x384xbf16>, vector<4x384xbf16>, vector<4x384xbf16> -> vector<36x384xbf16>
    %c0_19 = arith.constant 0 : index
    %c0_20 = arith.constant 0 : index
    %22 = vector.load %arg2[%c0_19, %c0_20] : memref<8x36xbf16, #tpu.memory_space<vmem>>, vector<8x36xbf16>
    %cst = arith.constant dense<0.000000e+00> : vector<8x384xf32>
    %23 = tpu.matmul %22, %21, %cst {dimension_numbers = #tpu.dot_dimension_numbers<[1], [0], [0], [1], [0, 0, 1, 1], [], []>} : vector<8x36xbf16>, vector<36x384xbf16>, vector<8x384xf32> -> vector<8x384xf32>
    %24 = tpu.iota {dimensions = array<i32: 1>} : vector<1x384xi32>
    %c18_i32 = arith.constant 18 : i32
    %c0_i32_21 = arith.constant 0 : i32
    %25 = arith.cmpi eq, %c18_i32, %c0_i32_21 : i32
    %c1_i32 = arith.constant 1 : i32
    %26 = arith.select %25, %c1_i32, %c18_i32 : i32
    %27 = vector.broadcast %26 : i32 to vector<1x384xi32>
    %28 = arith.remsi %24, %27 : vector<1x384xi32>
    %c0_i32_22 = arith.constant 0 : i32
    %29 = vector.broadcast %c0_i32_22 : i32 to vector<1x384xi32>
    %30 = arith.cmpi ne, %28, %29 : vector<1x384xi32>
    %c0_i32_23 = arith.constant 0 : i32
    %31 = vector.broadcast %c0_i32_23 : i32 to vector<1x384xi32>
    %32 = arith.cmpi slt, %28, %31 : vector<1x384xi32>
    %c0_i32_24 = arith.constant 0 : i32
    %33 = arith.cmpi slt, %26, %c0_i32_24 : i32
    %34 = vector.broadcast %33 : i1 to vector<1x384xi1>
    %35 = vector.broadcast %34 : vector<1x384xi1> to vector<1x384xi1>
    %36 = arith.xori %32, %35 : vector<1x384xi1>
    %37 = arith.andi %36, %30 : vector<1x384xi1>
    %38 = vector.broadcast %26 : i32 to vector<1x384xi32>
    %39 = arith.addi %28, %38 : vector<1x384xi32>
    %40 = arith.select %37, %39, %28 : vector<1x384xi1>, vector<1x384xi32>
    %c16_i32 = arith.constant 16 : i32
    %41 = vector.broadcast %c16_i32 : i32 to vector<1x384xi32>
    %42 = arith.cmpi slt, %40, %41 : vector<1x384xi32>
    %c288_i32 = arith.constant 288 : i32
    %43 = vector.broadcast %c288_i32 : i32 to vector<1x384xi32>
    %44 = arith.cmpi slt, %24, %43 : vector<1x384xi32>
    %45 = arith.andi %42, %44 : vector<1x384xi1>
    %46 = arith.extui %45 : vector<1x384xi1> to vector<1x384xi32>
    %47 = arith.sitofp %46 : vector<1x384xi32> to vector<1x384xf32>
    %48 = vector.broadcast %47 : vector<1x384xf32> to vector<8x384xf32>
    %49 = arith.mulf %23, %48 : vector<8x384xf32>
    %c0_25 = arith.constant 0 : index
    %c0_26 = arith.constant 0 : index
    %50 = vector.load %arg6[%c0_25, %c0_26] : memref<8x1xf32, #tpu.memory_space<vmem>>, vector<8x1xf32>
    %cst_27 = arith.constant dense<0.000000e+00> : vector<8xf32>
    %51 = vector.multi_reduction <add>, %49, %cst_27 [1] : vector<8x384xf32> to vector<8xf32>
    %52 = vector.shape_cast %51 : vector<8xf32> to vector<8x1xf32>
    %53 = arith.addf %50, %52 : vector<8x1xf32>
    %c0_28 = arith.constant 0 : index
    %c0_29 = arith.constant 0 : index
    %54 = vector.load %arg6[%c0_28, %c0_29] : memref<8x1xf32, #tpu.memory_space<vmem>>, vector<8x1xf32>
    tpu.vector_store %arg6[%c0_28, %c0_29], %53 {strides = array<i32>} : memref<8x1xf32, #tpu.memory_space<vmem>>, vector<8x1xf32>,
    %c0_30 = arith.constant 0 : index
    %c0_31 = arith.constant 0 : index
    %55 = vector.load %arg7[%c0_30, %c0_31] : memref<8x1xf32, #tpu.memory_space<vmem>>, vector<8x1xf32>
    %56 = arith.mulf %49, %23 : vector<8x384xf32>
    %cst_32 = arith.constant dense<0.000000e+00> : vector<8xf32>
    %57 = vector.multi_reduction <add>, %56, %cst_32 [1] : vector<8x384xf32> to vector<8xf32>
    %58 = vector.shape_cast %57 : vector<8xf32> to vector<8x1xf32>
    %59 = arith.addf %55, %58 : vector<8x1xf32>
    %c0_33 = arith.constant 0 : index
    %c0_34 = arith.constant 0 : index
    %60 = vector.load %arg7[%c0_33, %c0_34] : memref<8x1xf32, #tpu.memory_space<vmem>>, vector<8x1xf32>
    tpu.vector_store %arg7[%c0_33, %c0_34], %59 {strides = array<i32>} : memref<8x1xf32, #tpu.memory_space<vmem>>, vector<8x1xf32>,
    %61 = arith.index_cast %arg0 : i32 to index
    %c0_35 = arith.constant 0 : index
    %c0_36 = arith.constant 0 : index
    %62 = vector.load %arg5[%61, %c0_35, %c0_36] : memref<2x8x384xf32, #tpu.memory_space<vmem>>, vector<1x8x384xf32>
    %63 = vector.shape_cast %62 : vector<1x8x384xf32> to vector<8x384xf32>
    %64 = vector.shape_cast %23 : vector<8x384xf32> to vector<1x8x384xf32>
    tpu.vector_store %arg5[%61, %c0_35, %c0_36], %64 {strides = array<i32>} : memref<2x8x384xf32, #tpu.memory_space<vmem>>, vector<1x8x384xf32>,
    %c1_i32_37 = arith.constant 1 : i32
    %65 = arith.cmpi eq, %arg0, %c1_i32_37 : i32
    %66 = arith.extui %65 : i1 to i32
    %c0_i32_38 = arith.constant 0 : i32
    %67 = arith.cmpi ne, %66, %c0_i32_38 : i32
    scf.if %67 {
      %c0_39 = arith.constant 0 : index
      %c0_40 = arith.constant 0 : index
      %68 = vector.load %arg6[%c0_39, %c0_40] : memref<8x1xf32, #tpu.memory_space<vmem>>, vector<8x1xf32>
      %cst_41 = arith.constant 0.001953125 : f32
      %69 = vector.broadcast %cst_41 : f32 to vector<8x1xf32>
      %70 = arith.mulf %68, %69 : vector<8x1xf32>
      %c0_42 = arith.constant 0 : index
      %c0_43 = arith.constant 0 : index
      %71 = vector.load %arg7[%c0_42, %c0_43] : memref<8x1xf32, #tpu.memory_space<vmem>>, vector<8x1xf32>
      %cst_44 = arith.constant 0.001953125 : f32
      %72 = vector.broadcast %cst_44 : f32 to vector<8x1xf32>
      %73 = arith.mulf %71, %72 : vector<8x1xf32>
      %74 = arith.mulf %70, %70 : vector<8x1xf32>
      %75 = arith.subf %73, %74 : vector<8x1xf32>
      %cst_45 = arith.constant 0.000000e+00 : f32
      %76 = vector.broadcast %cst_45 : f32 to vector<8x1xf32>
      %77 = arith.maximumf %75, %76 : vector<8x1xf32>
      %cst_46 = arith.constant 9.99999974E-6 : f32
      %78 = vector.broadcast %cst_46 : f32 to vector<8x1xf32>
      %79 = arith.addf %77, %78 : vector<8x1xf32>
      %80 = math.rsqrt %79 : vector<8x1xf32>
      %c0_47 = arith.constant 0 : index
      %c0_48 = arith.constant 0 : index
      %81 = vector.load %arg3[%c0_47, %c0_48] : memref<8x1xf32, #tpu.memory_space<vmem>>, vector<8x1xf32>
      %82 = arith.mulf %81, %80 : vector<8x1xf32>
      %c0_49 = arith.constant 0 : index
      %c0_50 = arith.constant 0 : index
      %83 = vector.load %arg4[%c0_49, %c0_50] : memref<8x1xf32, #tpu.memory_space<vmem>>, vector<8x1xf32>
      %84 = arith.mulf %70, %82 : vector<8x1xf32>
      %85 = arith.subf %83, %84 : vector<8x1xf32>
      %c0_51 = arith.constant 0 : index
      %c0_52 = arith.constant 0 : index
      %c0_53 = arith.constant 0 : index
      %86 = vector.load %arg5[%c0_51, %c0_52, %c0_53] : memref<2x8x384xf32, #tpu.memory_space<vmem>>, vector<2x8x384xf32>
      %87 = vector.shape_cast %82 : vector<8x1xf32> to vector<1x8x1xf32>
      %88 = vector.broadcast %87 : vector<1x8x1xf32> to vector<2x8x384xf32>
      %89 = arith.mulf %86, %88 : vector<2x8x384xf32>
      %90 = vector.shape_cast %85 : vector<8x1xf32> to vector<1x8x1xf32>
      %91 = vector.broadcast %90 : vector<1x8x1xf32> to vector<2x8x384xf32>
      %92 = arith.addf %89, %91 : vector<2x8x384xf32>
      %cst_54 = arith.constant 0.000000e+00 : f32
      %93 = vector.broadcast %cst_54 : f32 to vector<2x8x384xf32>
      %94 = arith.maximumf %92, %93 : vector<2x8x384xf32>
      %c0_55 = arith.constant 0 : index
      %c0_56 = arith.constant 0 : index
      %c0_57 = arith.constant 0 : index
      %95 = vector.load %arg5[%c0_55, %c0_56, %c0_57] : memref<2x8x384xf32, #tpu.memory_space<vmem>>, vector<2x8x384xf32>
      tpu.vector_store %arg5[%c0_55, %c0_56, %c0_57], %94 {strides = array<i32>} : memref<2x8x384xf32, #tpu.memory_space<vmem>>, vector<2x8x384xf32>,
    } else {
    }
    return
  }
  func.func @transform_0(%arg0: i32) -> (i32, i32, i32) {
    %c0_i32 = arith.constant 0 : i32
    %c0_i32_0 = arith.constant 0 : i32
    %c0_i32_1 = arith.constant 0 : i32
    return %arg0, %c0_i32, %c0_i32_0 : i32, i32, i32
  }
  func.func @transform_1(%arg0: i32) -> (i32, i32) {
    %c0_i32 = arith.constant 0 : i32
    %c0_i32_0 = arith.constant 0 : i32
    %c0_i32_1 = arith.constant 0 : i32
    return %c0_i32, %c0_i32_0 : i32, i32
  }
  func.func @transform_2(%arg0: i32) -> (i32, i32) {
    %c0_i32 = arith.constant 0 : i32
    %c0_i32_0 = arith.constant 0 : i32
    %c0_i32_1 = arith.constant 0 : i32
    return %c0_i32, %c0_i32_0 : i32, i32
  }
  func.func @transform_3(%arg0: i32) -> (i32, i32) {
    %c0_i32 = arith.constant 0 : i32
    %c0_i32_0 = arith.constant 0 : i32
    %c0_i32_1 = arith.constant 0 : i32
    return %c0_i32, %c0_i32_0 : i32, i32
  }
  func.func @transform_4(%arg0: i32) -> (i32, i32, i32) {
    %c0_i32 = arith.constant 0 : i32
    %c0_i32_0 = arith.constant 0 : i32
    %c0_i32_1 = arith.constant 0 : i32
    %c0_i32_2 = arith.constant 0 : i32
    return %c0_i32, %c0_i32_0, %c0_i32_1 : i32, i32, i32
  }
}

</mosaic_0001>

<bundles_post_ra>
// kernel: tpu_custom_call.1
= control target key start
LH: loop header
LB: loop body
LE: loop exit
PB: predicated region body
PF: predicated region fallthrough
CT: control target
= control target key end

     0   :  { %9 = vsyncpa [#allocation5], 0  ;;  %s1064_s0 = inlined_call_operand.vmem [shape: bf16[2,4,432], index: 0, kind: input, shape index: {}]   ;;  %s1065_s1 = inlined_call_operand.hbm [shape: bf16[8,36], index: 1, kind: input, shape index: {}]   ;;  %s1066_s2 = inlined_call_operand.vmem [shape: f32[8,1], index: 2, kind: input, shape index: {}]   ;;  %s1067_s3 = inlined_call_operand.vmem [shape: f32[8,1], index: 3, kind: input, shape index: {}]   ;;  %s1068_s4 = inlined_call_operand.hbm [shape: f32[2,8,384], index: 4, kind: output, shape index: {}]  }
   0x1   :  { %10 = vsyncpa [#allocation6], 0  ;;  %s910_s15 = smov 0  }
   0x2 LB: > { %s916_s16 = sadd.s32 4294967295, %s865_s15   ;;  %p711_p0 = scmp.ge.s32.totalorder %s865_s15, 1  ;;  %s865_s15 = sphi %s910_s15, %s16_s15  }
   0x3   : > { %p131_p1 = scmp.lt.s32.totalorder %s865_s15, 3  ;;  %p712_p2 = scmp.ne.s32.totalorder %s916_s16, 0 }
   0x4   : > { %p765_p4 = scmp.eq.s32.totalorder %s916_s16, 0  ;;  %s867_s18 = smov [#allocation4]  }
   0x5   : > { %p921_p3 = pnand %p711_p0, %p131_p1  ;;  %s144_s19 = sshll.u32 %s867_s18, 4  ;;  %s145_s19 = int_to_ptr.vmem [resolvable:$true] %s144_s19 }
   0x6   : > { %s812_s20 = scalar_lea.vmem %s145_s19, 64  ;;  %p820_p11 = scmp.lt.s32.totalorder %s145_s19, %s145_s19 }
   0x7   : > { %p761_p5 = pneg %p921_p3  ;;  %p813_p8 = scmp.ne.s32.totalorder %s145_s19, %s812_s20 }
   0x8   : > { %p821_p12 = scmp.lt.s32.totalorder %s812_s20, %s812_s20 }
   0x9   : > { %p762_p6 = pnand %p765_p4, %p761_p5 }
   0xa   : > { %p822_p13 = por %p821_p12, %p820_p11 }
   0xb   : > { %p803_p7 = pneg %p762_p6 }
   0xd   : > { %p815_p9 = pnand %p813_p8, %p803_p7 }
   0xf   : > { %p816_p10 = pneg %p815_p9 }
  0x11   : > { %p823_p0 = pnand %p822_p13, %p816_p10 }
  0x13   : > { %826 = shalt.err (!%p823_p0)
}
  0x14   : > { %764 = dma.hbm_to_vmem [thread:$0]  (!%p762_p6), %s1065_s1, 64, %s145_s19, [#allocation5]  }
  0x15   : > { %171 = sbr.rel (%p921_p3) target bundleno = 747 (0x2eb), region = 36 }
  0x1a   : > { %856 = dma.done.wait (%p765_p4), [#allocation5], 64  }
  0x1b   : > { %858 = vsyncadd (%p765_p4), [#allocation5], 4294967232  ;;  %p192_p1 = scmp.lt.s32.totalorder %s916_s16, 1 }
  0x1c   : > { %201 = sbr.rel (%p712_p2) target bundleno = 35 (0x23), region = 44 }
  0x1d   : > { %s193_s23 = scalar_select %p192_p1, %s916_s16, 1 }
  0x1f   : > { %s731_s24 = sshll.u32 %s193_s23, 3 }
  0x20   : > { %s944_s27 = scalar_lea.vmem %s1064_s0, %s731_s24 }
  0x21   : > { %vm202_vm0 = vcmask 7168   ;;  %v868_v0 = vmov 0.0  }
  0x22   : > { %203 = vst.msk [vmem:[#allocation2] sm:$0xff] %vm202_vm0, %v868_v0  ;;  %204 = vst.msk [vmem:[#allocation3] sm:$0xff] %vm202_vm0, %v868_v0 }
  0x23 PF: > { %v206_v1 = vld [vmem:[%s944_s27] sm:$0xff]  ;;  %v212_v2 = vlaneseq  ;;  %v869_v3 = vmov 1983009808   ;;  %s870_s28 = smov 90   ;;  %s871_s29 = smov 109   ;;  %v874_v17 = vmov 0.0  }
  0x24   : > { %v210_v4 = vunpack.c.l.s4 %v869_v3  ;;  %v254_v7 = vcombine.high %v206_v1, %v206_v1  ;;  %v225_v9 = vcombine.low %v206_v1, %v206_v1  ;;  %s872_s30 = smov 108   ;;  %s873_s5 = smov 92   ;;  %737 = vmatprep.subr.bf16.mxu1 %v874_v17  ;;  %v878_v20 = vmov 0   ;;  %v205_v60 = vld [vmem:[%s944_s27] sm:$0x3f] }
  0x25   : > { %v213_v5 = vshrl.u32 %v212_v2, 7  ;;  %s875_s6 = smov 91   ;;  %s876_s7 = smov 127   ;;  %447 = vmatprep.mubr.bf16.mxu0 %v878_v20  ;;  %vm880_vm1 = vmmov 0   ;;  %vm346_vm2 = vcmask 736256   ;;  %vm350_vm3 = vcmask 1041408  }
  0x26   : > { %v211_v6 = vunpack.c.0.s8 %v210_v4  ;;  %s877_s8 = smov 126   ;;  %s879_s9 = smov 110   ;;  %743 = vmatprep.mubr.msk.bf16.mxu1 %vm880_vm1, %v874_v17  ;;  %vm310_vm4 = vcmask 883712   ;;  %vm322_vm5 = vcmask 752640   ;;  %vm298_vm6 = vcmask 891904  }
  0x27   : > { %vm334_vm7 = vcmask 744448   ;;  %vm360_vm8 = vcmask 1043456   ;;  %vm367_vm9 = vcmask 1045504   ;;  %vm250_vm10 = vcmask 1039360   ;;  %s732_s10 = smul.u32 24, %s916_s16  ;;  %p726_p2 = scmp.ne.s32.totalorder %s916_s16, 1 }
  0x28   : > { %v950_v8 = vsub.s32 %v211_v6, %v213_v5  ;;  %vm272_vm11 = vcmask 1031168   ;;  %vm285_vm12 = vcmask 900096   ;;  %vm402_vm13 = vcmask 293888  }
  0x29   : > { %s586_s11 = scalar_lea.vmem [#allocation7], %s732_s10 }
  0x2a   : > { %v261_v10 = vrot.slane %v254_v7, %v950_v8  ;;  %v239_v11 = vrot.slane %v206_v1, %v950_v8  ;;  %v232_v13 = vrot.slane %v225_v9, %v950_v8  ;;  %v215_v61 = vrot.slane %v205_v60, %v950_v8 }
  0x2c   : > { %342 = vrot.lane.b32.xlu1 %v261_v10, %s870_s28  ;;  %338 = vrot.lane.b32.xlu0 %v239_v11, %s870_s28  ;;  %v241_v12 = vcombine.high %v239_v11, %v239_v11  ;;  %v240_v14 = vcombine.high %v232_v13, %v232_v13  ;;  %v263_v15 = vcombine.low %v261_v10, %v261_v10 }
  0x2d   : > { %v262_v16 = vcombine.low %v239_v11, %v239_v11  ;;  %v276_v18 = vcombine.low %v232_v13, %v232_v13  ;;  %v289_v19 = vcombine.high %v261_v10, %v261_v10  ;;  %v223_v0 = vcombine.high %v215_v61, %v215_v61 }
  0x30   : > { %294 = vrot.lane.b32.xlu0 %v261_v10, %s871_s29  ;;  %292 = vrot.lane.b32.xlu1 %v241_v12, %s871_s29 }
  0x34   : > { %340 = vrot.lane.b32.xlu0 %v241_v12, %s870_s28  ;;  %304 = vrot.lane.b32.xlu1 %v240_v14, %s872_s30 }
  0x38   : > { %306 = vrot.lane.b32.xlu0 %v239_v11, %s872_s30  ;;  %290 = vrot.lane.b32.xlu1 %v239_v11, %s871_s29 }
  0x3c   : > { %302 = vrot.lane.b32.xlu0 %v232_v13, %s872_s30  ;;  %316 = vrot.lane.b32.xlu1 %v239_v11, %s873_s5 }
  0x40   : > { %318 = vrot.lane.b32.xlu0 %v263_v15, %s873_s5  ;;  %314 = vrot.lane.b32.xlu1 %v262_v16, %s873_s5 }
  0x44   : > { %328 = vrot.lane.b32.xlu0 %v232_v13, %s875_s6  ;;  %330 = vrot.lane.b32.xlu1 %v262_v16, %s875_s6 }
  0x48   : > { %326 = vrot.lane.b32.xlu0 %v276_v18, %s875_s6  ;;  %344 = vrot.lane.b32.xlu1 %v289_v19, %s870_s28 }
  0x4c   : > { %244 = vrot.lane.b32.xlu0 %v240_v14, %s876_s7  ;;  %246 = vrot.lane.b32.xlu1 %v239_v11, %s876_s7 }
  0x50   : > { %242 = vrot.lane.b32.xlu0 %v232_v13, %s876_s7  ;;  %266 = vrot.lane.b32.xlu1 %v239_v11, %s877_s8 }
  0x54   : > { %268 = vrot.lane.b32.xlu0 %v263_v15, %s877_s8  ;;  %296 = vrot.lane.b32.xlu1 %v289_v19, %s871_s29 }
  0x58   : > { %308 = vrot.lane.b32.xlu0 %v241_v12, %s872_s30  ;;  %264 = vrot.lane.b32.xlu1 %v262_v16, %s877_s8 }
  0x5c   : > { %279 = vrot.lane.b32.xlu0 %v232_v13, %s879_s9  ;;  %281 = vrot.lane.b32.xlu1 %v262_v16, %s879_s9 }
  0x60   : > { %320 = vrot.lane.b32.xlu0 %v261_v10, %s873_s5  ;;  %277 = vrot.lane.b32.xlu1 %v276_v18, %s879_s9 }
  0x64   : > { %332 = vrot.lane.b32.xlu0 %v239_v11, %s875_s6  ;;  %248 = vrot.lane.b32.xlu1 %v241_v12, %s876_s7 }
  0x68   : > { %270 = vrot.lane.b32.xlu0 %v261_v10, %s877_s8  ;;  %283 = vrot.lane.b32.xlu1 %v239_v11, %s879_s9 }
  0x9e   : > { %v343_v21 = vpop.permute.xlu1 %342  ;;  %v339_v22 = vpop.permute.xlu0 %338 }
  0xa2   : > { %v965_v23 = vpop.permute.xlu0 %294  ;;  %v293_v24 = vpop.permute.xlu1 %292 }
  0xa3   : > { %v300_v38 = vsel %vm298_vm6, %v293_v24, %v965_v23 }
  0xa6   : > { %v341_v25 = vpop.permute.xlu0 %340  ;;  %v305_v26 = vpop.permute.xlu1 %304 }
  0xa7   : > { %v348_v27 = vsel %vm346_vm2, %v341_v25, %v343_v21  ;;  %v347_v28 = vsel %vm346_vm2, %v339_v22, %v341_v25  ;;  %v208_v22 = vcombine.high %v205_v60, %v205_v60 }
  0xa8   : > { %719 = vmatprep.subr.msk.bf16.mxu0 %vm350_vm3, %v348_v27  ;;  %v407_v29 = vsel %vm350_vm3, %v347_v28, 0  ;;  %v401_v27 = vld [vmem:[#allocation4] sm:$0xf] }
  0xa9   : > { %426 = vmatpush1.bf16.msra.mxu0 %v407_v29 }
  0xaa   : > { %v971_v30 = vpop.permute.xlu0 %306  ;;  %v291_v31 = vpop.permute.xlu1 %290 }
  0xab   : > { %v312_v36 = vsel %vm310_vm4, %v305_v26, %v971_v30  ;;  %v299_v47 = vsel %vm298_vm6, %v291_v31, %v293_v24 }
  0xac   : > { %v382_v39 = vsel %vm350_vm3, %v300_v38, %v312_v36 }
  0xae   : > { %v303_v32 = vpop.permute.xlu0 %302  ;;  %v317_v33 = vpop.permute.xlu1 %316 }
  0xaf   : > { %v311_v42 = vsel %vm310_vm4, %v303_v32, %v305_v26  ;;  %v222_v32 = vrot.slane %v208_v22, %v950_v8 }
  0xb0   : > { %v379_v48 = vsel %vm350_vm3, %v299_v47, %v311_v42 }
  0xb2   : > { %v319_v34 = vpop.permute.xlu0 %318  ;;  %v315_v35 = vpop.permute.xlu1 %314 }
  0xb3   : > { %v324_v37 = vsel %vm322_vm5, %v317_v33, %v319_v34  ;;  %v323_v45 = vsel %vm322_vm5, %v315_v35, %v317_v33 }
  0xb4   : > { %v389_v44 = vsel %vm360_vm8, %v382_v39, %v324_v37  ;;  %v387_v52 = vsel %vm360_vm8, %v379_v48, %v323_v45 }
  0xb6   : > { %v329_v40 = vpop.permute.xlu0 %328  ;;  %v331_v41 = vpop.permute.xlu1 %330 }
  0xb7   : > { %v336_v43 = vsel %vm334_vm7, %v329_v40, %v331_v41 }
  0xb8   : > { %v396_v46 = vsel %vm367_vm9, %v389_v44, %v336_v43 }
  0xb9   : > { %427 = vmatprep.subr.bf16.mxu0 %v396_v46 }
  0xba   : > { %v327_v49 = vpop.permute.xlu0 %326  ;;  %v345_v50 = vpop.permute.xlu1 %344 }
  0xbb   : > { %v335_v51 = vsel %vm334_vm7, %v327_v49, %v329_v40  ;;  %v349_v53 = vsel %vm346_vm2, %v343_v21, %v345_v50 }
  0xbc   : > { %v393_v54 = vsel %vm367_vm9, %v387_v52, %v335_v51  ;;  %v413_v55 = vsel %vm350_vm3, %v349_v53, 0 }
  0xbd   : > { %428 = vmatpush1.bf16.msra.mxu0 %v393_v54  ;;  %738 = vmatpush3.bf16.msra.mxu1 %v413_v55 }
  0xbe   : > { %v245_v56 = vpop.permute.xlu0 %244  ;;  %v247_v57 = vpop.permute.xlu1 %246  ;;  %739 = vmatprep.subr.bf16.mxu1 %v874_v17 }
  0xbf   : > { %v252_v4 = vsel %vm250_vm10, %v245_v56, %v247_v57 }
  0xc0   : > { %v356_v6 = vsel %vm350_vm3, %v223_v0, %v252_v4 }
  0xc2   : > { %v243_v58 = vpop.permute.xlu0 %242  ;;  %v267_v59 = vpop.permute.xlu1 %266 }
  0xc3   : > { %v251_v10 = vsel %vm250_vm10, %v243_v58, %v245_v56 }
  0xc4   : > { %v353_v15 = vsel %vm350_vm3, %v215_v61, %v251_v10 }
  0xc6   : > { %v269_v62 = vpop.permute.xlu0 %268  ;;  %v297_v63 = vpop.permute.xlu1 %296 }
  0xc7   : > { %v274_v5 = vsel %vm272_vm11, %v267_v59, %v269_v62  ;;  %v301_v26 = vsel %vm298_vm6, %v965_v23, %v297_v63 }
  0xc8   : > { %v364_v12 = vsel %vm360_vm8, %v356_v6, %v274_v5 }
  0xca   : > { %v309_v1 = vpop.permute.xlu0 %308  ;;  %v265_v3 = vpop.permute.xlu1 %264 }
  0xcb   : > { %v273_v13 = vsel %vm272_vm11, %v265_v3, %v267_v59  ;;  %v313_v19 = vsel %vm310_vm4, %v971_v30, %v309_v1 }
  0xcc   : > { %v362_v21 = vsel %vm360_vm8, %v353_v15, %v273_v13  ;;  %v385_v28 = vsel %vm350_vm3, %v301_v26, %v313_v19 }
  0xce   : > { %v280_v7 = vpop.permute.xlu0 %279  ;;  %v282_v9 = vpop.permute.xlu1 %281 }
  0xcf   : > { %v287_v11 = vsel %vm285_vm12, %v280_v7, %v282_v9 }
  0xd0   : > { %v372_v14 = vsel %vm367_vm9, %v364_v12, %v287_v11 }
  0xd1   : > { %429 = vmatprep.subr.bf16.mxu0 %v372_v14 }
  0xd2   : > { %v321_v16 = vpop.permute.xlu0 %320  ;;  %v278_v18 = vpop.permute.xlu1 %277 }
  0xd3   : > { %v286_v20 = vsel %vm285_vm12, %v278_v18, %v280_v7  ;;  %v325_v24 = vsel %vm322_vm5, %v319_v34, %v321_v16 }
  0xd4   : > { %v369_v25 = vsel %vm367_vm9, %v362_v21, %v286_v20  ;;  %v391_v33 = vsel %vm360_vm8, %v385_v28, %v325_v24 }
  0xd5   : > { %430 = vmatpush1.bf16.msra.mxu0 %v369_v25  ;;  %v566_v25 = vld [vmem:[#allocation2] sm:$0xff] }
  0xd6   : > { %v333_v29 = vpop.permute.xlu0 %332  ;;  %v249_v31 = vpop.permute.xlu1 %248 }
  0xd7   : > { %v337_v30 = vsel %vm334_vm7, %v331_v41, %v333_v29  ;;  %v253_v34 = vsel %vm250_vm10, %v247_v57, %v249_v31  ;;  %v497_v41 = vand.u32 127, %v212_v2 }
  0xd8   : > { %720 = vmatmul.mubr.msk.bf16.vlgmr.msra.gmra.mxu0 %vm402_vm13, %v401_v27  ;;  %v399_v35 = vsel %vm367_vm9, %v391_v33, %v337_v30  ;;  %v359_v37 = vsel %vm350_vm3, %v222_v32, %v253_v34 }
  0xd9   : > { %740 = vmatpush3.bf16.msra.mxu1 %v399_v35  ;;  %v498_v42 = vadd.s32 128, %v497_v41  ;;  %v1026_v43 = vmul.u32.u64.low 3817748708, %v497_v41  ;;  %v1027_v44 = vmul.u32.u64.high 3817748708, %v497_v41, %v1026_v43  ;;  %v499_v45 = vadd.s32 256, %v497_v41 }
  0xda   : > { %v271_v23 = vpop.permute.xlu0 %270  ;;  %v284_v36 = vpop.permute.xlu1 %283  ;;  %741 = vmatprep.subr.bf16.mxu1 %v874_v17 }
  0xdb   : > { %v275_v38 = vsel %vm272_vm11, %v269_v62, %v271_v23  ;;  %v288_v39 = vsel %vm285_vm12, %v282_v9, %v284_v36  ;;  %v1029_v46 = vmul.u32.u64.low 3817748708, %v498_v42  ;;  %v1030_v47 = vmul.u32.u64.high 3817748708, %v498_v42, %v1029_v46 }
  0xdc   : > { %v366_v8 = vsel %vm360_vm8, %v359_v37, %v275_v38  ;;  %v1032_v48 = vmul.u32.u64.low 3817748708, %v499_v45  ;;  %v1033_v49 = vmul.u32.u64.high 3817748708, %v499_v45, %v1032_v48  ;;  %v506_v50 = vshrl.u32 %v1027_v44, 4 }
  0xdd   : > { %v375_v40 = vsel %vm367_vm9, %v366_v8, %v288_v39  ;;  %v517_v51 = vshrl.u32 %v1030_v47, 4  ;;  %vm553_vm10 = vcmp.lt.s32.totalorder %v499_v45, 288  ;;  %vm572_vm12 = vcmask 7168  }
  0xde   : > { %742 = vmatpush3.bf16.msra.mxu1 %v375_v40  ;;  %v507_v52 = vmul.u32 18, %v506_v50  ;;  %v528_v53 = vshrl.u32 %v1033_v49, 4 }
  0xdf   : > { %v518_v2 = vmul.u32 18, %v517_v51 }
  0xe0   : > { %v508_v54 = vsub.s32 %v497_v41, %v507_v52  ;;  %v529_v55 = vmul.u32 18, %v528_v53 }
  0xe1   : > { %744 = vmatmul.mubr.msk.bf16.vlgmr.msra.gmra.mxu1 %vm402_vm13, %v401_v27  ;;  %v519_v56 = vsub.s32 %v498_v42, %v518_v2  ;;  %v574_v27 = vld [vmem:[#allocation3] sm:$0xff] }
  0xe2   : > { %vm533_vm14 = vcmp.ne.s32.totalorder %v508_v54, 0  ;;  %vm536_vm15 = vcmp.lt.s32.totalorder %v508_v54, 0  ;;  %v530_v57 = vsub.s32 %v499_v45, %v529_v55  ;;  %v542_v58 = vadd.s32 18, %v508_v54 }
  0xe3   : > { %vm534_vm0 = vcmp.ne.s32.totalorder %v519_v56, 0  ;;  %vm537_vm1 = vcmp.lt.s32.totalorder %v519_v56, 0  ;;  %vm539_vm2 = vmand %vm536_vm15, %vm533_vm14  ;;  %v543_v59 = vadd.s32 18, %v519_v56 }
  0xe4   : > { %vm540_vm3 = vmand %vm537_vm1, %vm534_vm0  ;;  %vm535_vm4 = vcmp.ne.s32.totalorder %v530_v57, 0  ;;  %vm538_vm5 = vcmp.lt.s32.totalorder %v530_v57, 0  ;;  %v544_v60 = vadd.s32 18, %v530_v57  ;;  %v545_v61 = vsel %vm539_vm2, %v542_v58, %v508_v54 }
  0xe5   : > { %v546_v62 = vsel %vm540_vm3, %v543_v59, %v519_v56  ;;  %vm541_vm6 = vmand %vm538_vm5, %vm535_vm4  ;;  %vm548_vm7 = vcmp.lt.s32.totalorder %v545_v61, 16 }
  0xe6   : > { %vm549_vm8 = vcmp.lt.s32.totalorder %v546_v62, 16  ;;  %v547_v63 = vsel %vm541_vm6, %v544_v60, %v530_v57  ;;  %v722_v1 = vsel %vm548_vm7, 1.0, %v874_v17 }
  0xe7   : > { %v723_v3 = vsel %vm549_vm8, 1.0, %v874_v17  ;;  %vm550_vm9 = vcmp.lt.s32.totalorder %v547_v63, 16 }
  0xe8   : > { %vm556_vm11 = vmand %vm550_vm9, %vm553_vm10 }
  0xe9   : > { %v724_v10 = vsel %vm556_vm11, 1.0, %v874_v17 }
 0x198   : > { %v449_v0 = vpop.f32.mrf.mxu0 }
 0x199   : > { %587 = vst [vmem:[%s586_s11] sm:$0xff] %v449_v0  ;;  %v563_v5 = vmul.f32 %v722_v1, %v449_v0 }
 0x19a   : > { %v451_v4 = vpop.f32.mrf.mxu0 }
 0x19b   : > { %588 = vst [vmem:[%s586_s11 + $0x8] sm:$0xff] %v451_v4  ;;  %v564_v6 = vmul.f32 %v723_v3, %v451_v4  ;;  %v575_v11 = vmul.f32 %v563_v5, %v449_v0 }
 0x19c   : > { %v453_v7 = vpop.f32.mrf.mxu0 }
 0x19d   : > { %v576_v12 = vmul.f32 %v564_v6, %v451_v4  ;;  %v567_v15 = vadd.f32 %v564_v6, %v563_v5 }
 0x19e   : > { %v454_v9 = vpop.f32.mrf.mxu0 }
 0x19f   : > { %v578_v20 = vadd.f32 %v576_v12, %v575_v11 }
 0x1a1   : > { %v490_v13 = vpop.f32.mrf.mxu1 }
 0x1a2   : > { %589 = vst [vmem:[%s586_s11 + $0x10] sm:$0xff] %v490_v13  ;;  %v565_v14 = vmul.f32 %v724_v10, %v490_v13 }
 0x1a3   : > { %v745_v16 = vpop.f32.mrf.mxu1 }
 0x1a4   : > { %v568_v18 = vadd.f32 %v567_v15, %v565_v14  ;;  %v577_v19 = vmul.f32 %v565_v14, %v490_v13 }
 0x1a5   : > { %v493_v21 = vpop.f32.mrf.mxu1 }
 0x1a6   : > { %569 = vadd.xlane.f32.xlu0 %v568_v18  ;;  %v579_v22 = vadd.f32 %v578_v20, %v577_v19 }
 0x1a7   : > { %v746_v24 = vpop.f32.mrf.mxu1 }
 0x1a8   : > { %580 = vadd.xlane.f32.xlu1 %v579_v22 }
 0x22f   : > { %v570_v26 = vpop.xlane.xlu0 %569 }
 0x230   : > { %v571_v17 = vadd.f32 %v570_v26, %v566_v25  ;;  %593 = sbr.rel (%p726_p2) target bundleno = 731 (0x2db), region = 48 }
 0x231   : > { %v581_v28 = vpop.xlane.xlu1 %580 }
 0x232   : > { %573 = vst.msk [vmem:[#allocation2] sm:$0xff] %vm572_vm12, %v571_v17  ;;  %v582_v29 = vadd.f32 %v581_v28, %v574_v27 }
 0x234   : > { %583 = vst.msk [vmem:[#allocation3] sm:$0xff] %vm572_vm12, %v582_v29 }
 0x235   : > { %v881_v32 = vmov 0   ;;  %v603_v38 = vld [vmem:[%s1066_s2] sm:$0xff]  ;;  %v608_v43 = vld [vmem:[#allocation7] sm:$0xff]  ;;  %v611_v47 = vld [vmem:[#allocation7 + $0x18] sm:$0xff] }
 0x236   : > { %798 = vset.pattern.permute.xlu0 %v881_v32  ;;  %v605_v40 = vld [vmem:[%s1067_s3] sm:$0xff]  ;;  %v612_v48 = vld [vmem:[#allocation7 + $0x20] sm:$0xff] }
 0x237   : > { %v609_v45 = vld [vmem:[#allocation7 + $0x8] sm:$0xff]  ;;  %v610_v46 = vld [vmem:[#allocation7 + $0x10] sm:$0xff] }
 0x238   : > { %v613_v49 = vld [vmem:[#allocation7 + $0x28] sm:$0xff] }
 0x239   : > { %v594_v31 = vld [vmem:[#allocation2] sm:$0xff] }
 0x23a   : > { %v595_v33 = vmul.f32 0.001953125, %v594_v31 }
 0x23b   : > { %v596_v30 = vld [vmem:[#allocation3] sm:$0xff] }
 0x23c   : > { %v597_v34 = vmul.f32 0.001953125, %v596_v30  ;;  %v598_v35 = vmul.f32 %v595_v33, %v595_v33 }
 0x23e   : > { %v599_v23 = vsub.f32 %v597_v34, %v598_v35 }
 0x240   : > { %v600_v36 = vmax.f32 %v599_v23, 0.0 }
 0x242   : > { %v601_v37 = vadd.f32 1e-05, %v600_v36 }
 0x244   : > { %799 = vrsqrt.f32 %v601_v37 }
 0x251   : > { %v800_v39 = vpop.eup %799 }
 0x252   : > { %v604_v8 = vmul.f32 %v800_v39, %v603_v38 }
 0x254   : > { %616 = vperm.xlu0 %798, %v604_v8   ;;  %v606_v41 = vmul.f32 %v604_v8, %v595_v33 }
 0x256   : > { %v607_v42 = vsub.f32 %v605_v40, %v606_v41 }
 0x258   : > { %627 = vperm.xlu0 %798, %v607_v42  }
 0x2cf   : > { %v617_v44 = vpop.permute.xlu0 %616 }
 0x2d0   : > { %v619_v50 = vmul.f32 %v617_v44, %v608_v43  ;;  %v620_v51 = vmul.f32 %v617_v44, %v609_v45  ;;  %v621_v52 = vmul.f32 %v617_v44, %v610_v46  ;;  %v622_v53 = vmul.f32 %v617_v44, %v611_v47 }
 0x2d1   : > { %v623_v2 = vmul.f32 %v617_v44, %v612_v48  ;;  %v624_v54 = vmul.f32 %v617_v44, %v613_v49 }
 0x2d3   : > { %v628_v55 = vpop.permute.xlu0 %627 }
 0x2d4   : > { %v630_v56 = vadd.f32 %v628_v55, %v619_v50  ;;  %v631_v57 = vadd.f32 %v628_v55, %v620_v51  ;;  %v632_v58 = vadd.f32 %v628_v55, %v621_v52  ;;  %v633_v59 = vadd.f32 %v628_v55, %v622_v53 }
 0x2d5   : > { %v634_v60 = vadd.f32 %v628_v55, %v623_v2  ;;  %v635_v61 = vadd.f32 %v628_v55, %v624_v54 }
 0x2d6   : > { %v636_v62 = vmax.f32 %v630_v56, 0.0  ;;  %v637_v63 = vmax.f32 %v631_v57, 0.0  ;;  %v638_v0 = vmax.f32 %v632_v58, 0.0  ;;  %v639_v1 = vmax.f32 %v633_v59, 0.0 }
 0x2d7   : > { %v640_v3 = vmax.f32 %v634_v60, 0.0  ;;  %v641_v4 = vmax.f32 %v635_v61, 0.0 }
 0x2d8   : > { %642 = vst [vmem:[#allocation7] sm:$0xff] %v636_v62  ;;  %643 = vst [vmem:[#allocation7 + $0x8] sm:$0xff] %v637_v63 }
 0x2d9   : > { %644 = vst [vmem:[#allocation7 + $0x10] sm:$0xff] %v638_v0  ;;  %645 = vst [vmem:[#allocation7 + $0x18] sm:$0xff] %v639_v1 }
 0x2da   : > { %646 = vst [vmem:[#allocation7 + $0x20] sm:$0xff] %v640_v3  ;;  %647 = vst [vmem:[#allocation7 + $0x28] sm:$0xff] %v641_v4 }
 0x2db PF: > { %p767_p3 = scmp.eq.s32.totalorder %s916_s16, 1  ;;  %s882_s18 = smov [#allocation7]  }
 0x2dc   : > { %s654_s19 = sshll.u32 %s882_s18, 4  ;;  %s655_s19 = int_to_ptr.vmem [resolvable:$true] %s654_s19 }
 0x2dd   : > { %s827_s20 = scalar_lea.vmem %s655_s19, 768  ;;  %p834_p7 = scmp.lt.s32.totalorder %s655_s19, %s655_s19 }
 0x2de   : > { %p828_p4 = scmp.ne.s32.totalorder %s655_s19, %s827_s20  ;;  %p835_p8 = scmp.lt.s32.totalorder %s827_s20, %s827_s20 }
 0x2e0   : > { %p829_p5 = pnand %p828_p4, %p767_p3  ;;  %p836_p9 = por %p835_p8, %p834_p7 }
 0x2e2   : > { %p830_p6 = pneg %p829_p5 }
 0x2e4   : > { %p837_p10 = pnand %p836_p9, %p830_p6 }
 0x2e6   : > { %840 = shalt.err (!%p837_p10)
}
 0x2e7   : > { %s883_s21 = smov 384   ;;  %s884_s22 = smov 24  }
 0x2e8   : > { %758 = dma.vmem_to_hbm [thread:$0]  (%p767_p3), %s655_s19, 768, %s1068_s4, [#allocation6], %s883_s21, %s883_s21, %s884_s22  }
 0x2e9   : > { %860 = dma.done.wait (%p767_p3), [#allocation6], 768  }
 0x2ea   : > { %862 = vsyncadd (%p767_p3), [#allocation6], 4294966528 }
 0x2eb PF: > { %s16_s15 = sadd.s32 1, %s865_s15  }
 0x2ec   : > { %p13_p11 = scmp.ge.s32.totalorder %s16_s15, 4  }
 0x2ee   :  { %15 = sbr.rel (!%p13_p11) target bundleno = 2 (0x2), region = 77 }
 0x2f3   :  { %670 = vsyncpa [#allocation5], 1 }
 0x2f4   :  { %672 = vsyncpa [#allocation5 + $0x1], 1 }
 0x2f5   :  { %673 = vsyncpa [#allocation6], 1 }
 0x2f6   :  { %675 = vsyncpa [#allocation6 + $0x1], 1 }

</bundles_post_ra>
